<compile_context>
chip_gen: v7x
topology: tpu7x:2x2x1
jax: 0.10.0
libtpu: 0.0.40
codegen_flags: <defaults>
</compile_context>

<pallas_src>
import jax
import jax.numpy as jnp
from jax.experimental import pallas as pl
from jax.experimental.pallas import tpu as pltpu

_NUM_DMA_CHUNKS = 4  # 2-4 outstanding DMAs is enough to saturate HBM BW.


def _cdiv(a, b):
    return -(-a // b)


def _resolve_size(size, total):
    """Resolve a torch.view-style size tuple (with at most one -1)."""
    size = tuple(int(s) for s in size)
    if -1 in size:
        assert size.count(-1) == 1, "only one -1 dimension allowed"
        known = 1
        for s in size:
            if s != -1:
                known *= s
        assert known > 0 and total % known == 0, \
            "view size incompatible with number of elements"
        size = tuple(total // known if s == -1 else s for s in size)
    prod = 1
    for s in size:
        prod *= s
    assert prod == total, "view size incompatible with number of elements"
    return size


def _choose_slab(n):
    """Widest lane-dense width (multiple of 128) that divides n exactly."""
    for lane in (2048, 1024, 512, 256, 128):
        if n % lane == 0:
            return n // lane, lane
    return None, None


def _row_chunks(rows, itemsize):
    """Split `rows` into <=_NUM_DMA_CHUNKS contiguous (start, size) pieces.

    Chunk starts are multiples of the dtype's native sublane packing
    (8 for 4-byte, 16 for 2-byte, 32 for 1-byte dtypes) so every DMA chunk
    begins on a layout-dense boundary.
    """
    sublane = max(8, 32 // max(1, itemsize))
    base = _cdiv(rows, _NUM_DMA_CHUNKS)
    base = _cdiv(base, sublane) * sublane
    chunks = []
    start = 0
    while start < rows:
        size = min(base, rows - start)
        chunks.append((start, size))
        start += size
    return chunks


def _make_hbm_copy_kernel(chunks, total_rows):
    """Kernel body: issue all chunk DMAs (HBM->HBM), then wait on all."""

    def kernel(x_hbm, o_hbm, sem):
        copies = []
        for i, (start, size) in enumerate(chunks):
            if start == 0 and size == total_rows:
                src, dst = x_hbm, o_hbm            # whole-array DMA
            else:
                src = x_hbm.at[pl.ds(start, size)]  # leading-axis row slice
                dst = o_hbm.at[pl.ds(start, size)]
            copies.append(pltpu.make_async_copy(src, dst, sem.at[i]))
        for c in copies:   # issue all (up to _NUM_DMA_CHUNKS outstanding)
            c.start()
        for c in copies:   # then drain
            c.wait()

    return kernel


def _materialized_copy(flat):
    """Fresh-buffer copy of a flat array via direct HBM->HBM DMA."""
    n = flat.shape[0]
    if n == 0:
        return flat
    dtype = flat.dtype
    itemsize = jnp.dtype(dtype).itemsize

    rows, lane = _choose_slab(n)
    if rows is not None:
        # Lane-dense 2-D slab; chunk along the leading (row) axis.
        src = flat.reshape(rows, lane)
        chunks = _row_chunks(rows, itemsize)
    else:
        # Ragged size (n % 128 != 0): a whole-array 1-D HBM->HBM DMA — no
        # (8,128) tiling constraint applies to a direct DMA between
        # identically shaped HBM buffers.
        src = flat
        chunks = [(0, n)]

    kernel = _make_hbm_copy_kernel(chunks, src.shape[0])

    out = pl.pallas_call(
        kernel,
        out_shape=jax.ShapeDtypeStruct(src.shape, dtype),
        in_specs=[pl.BlockSpec(memory_space=pl.ANY)],
        out_specs=pl.BlockSpec(memory_space=pl.ANY),
        scratch_shapes=[pltpu.SemaphoreType.DMA((len(chunks),))],
        cost_estimate=pl.CostEstimate(
            flops=0, transcendentals=0, bytes_accessed=2 * n * itemsize),
    )(src)
    return out.reshape(-1)


def resize(tensor, size, materialize=False):
    """Equivalent of `tensor.view(size)` for contiguous row-major tensors.

    materialize=False : metadata-only (exactly torch.view, zero HBM traffic).
    materialize=True  : same values, returned in a fresh buffer produced by
                        the Pallas HBM->HBM DMA copy kernel.
    """
    size = _resolve_size(size, tensor.size)
    if not materialize:
        return jnp.reshape(tensor, size)
    flat = tensor.reshape(-1)  # C-order flatten (metadata only)
    return _materialized_copy(flat).reshape(size)


class Resize:
    """Pallas counterpart of the PyTorch `Resize` module (forward = view)."""

    def __init__(self, size):
        self.size = size

    def __call__(self, tensor):
        # Values/shape/dtype identical to tensor.view(self.size); the Pallas
        # kernel materializes the result into a fresh HBM buffer.
        return resize(tensor, self.size, materialize=True)


if __name__ == "__main__":
    key = jax.random.PRNGKey(0)
    k0, k1, k2 = jax.random.split(key, 3)

    # 1) NCHW feature map, single whole-array DMA (2048 elems -> (1, 2048) slab).
    x = jax.random.normal(k0, (2, 4, 16, 16), dtype=jnp.float32)
    mod = Resize((2, 4, 256))
    out = jax.block_until_ready(mod(x))
    ref = jnp.reshape(x, (2, 4, 256))
    assert out.shape == ref.shape and out.dtype == ref.dtype
    assert bool(jnp.all(out == ref))

    # 2) Larger map exercising multiple outstanding DMA chunks
    #    (32768 elems -> (16, 2048) slab -> 2 row-chunk DMAs).
    y = jax.random.normal(k1, (4, 8, 32, 32), dtype=jnp.float32)
    out_y = jax.block_until_ready(resize(y, (4, -1), materialize=True))
    assert bool(jnp.all(out_y == jnp.reshape(y, (4, -1))))

    # 3) Ragged element count (210 % 128 != 0) -> whole-array 1-D DMA path.
    z = jax.random.normal(k2, (2, 3, 5, 7), dtype=jnp.float32)
    out_z = jax.block_until_ready(resize(z, (6, 35), materialize=True))
    assert bool(jnp.all(out_z == jnp.reshape(z, (6, 35))))

    # 4) Default (view) path with a -1 dim, like tensor.view(2, -1).
    out_view = jax.block_until_ready(resize(x, (2, -1)))
    assert out_view.shape == (2, 4 * 16 * 16)
    assert bool(jnp.all(out_view == jnp.reshape(x, (2, -1))))

    print("KERNEL_OK")
</pallas_src>

<mosaic_0001>
module attributes {stable_mosaic.version = 11 : i64} {
  func.func @kernel(%arg0: memref<1x2048xf32, #tpu.memory_space<any>>, %arg1: memref<1x2048xf32, #tpu.memory_space<any>>, %arg2: memref<1x!tpu.dma_semaphore, #tpu.memory_space<semaphore_mem>>) attributes {dimension_semantics = [], scalar_prefetch = 0 : i64, scratch_operands = 1 : i64, tpu.core_type = #tpu.core_type<tc>} {
    %c0_i32 = arith.constant 0 : i32
    %0 = tpu.memref_slice %arg2[%c0_i32] : memref<1x!tpu.dma_semaphore, #tpu.memory_space<semaphore_mem>> -> memref<1x!tpu.dma_semaphore, #tpu.memory_space<semaphore_mem>>
    %1 = tpu.memref_squeeze %0 : memref<1x!tpu.dma_semaphore, #tpu.memory_space<semaphore_mem>> -> memref<!tpu.dma_semaphore, #tpu.memory_space<semaphore_mem>>
    tpu.enqueue_dma source(%arg0 : memref<1x2048xf32, #tpu.memory_space<any>>) target(%arg1 : memref<1x2048xf32, #tpu.memory_space<any>>) target_semaphore(%1 : memref<!tpu.dma_semaphore, #tpu.memory_space<semaphore_mem>>)
    %c0_i32_0 = arith.constant 0 : i32
    %2 = tpu.memref_slice %arg2[%c0_i32_0] : memref<1x!tpu.dma_semaphore, #tpu.memory_space<semaphore_mem>> -> memref<1x!tpu.dma_semaphore, #tpu.memory_space<semaphore_mem>>
    %3 = tpu.memref_squeeze %2 : memref<1x!tpu.dma_semaphore, #tpu.memory_space<semaphore_mem>> -> memref<!tpu.dma_semaphore, #tpu.memory_space<semaphore_mem>>
    tpu.wait_dma2 semaphore(%3 : memref<!tpu.dma_semaphore, #tpu.memory_space<semaphore_mem>>) src(%arg0 : memref<1x2048xf32, #tpu.memory_space<any>>) dst(%arg1 : memref<1x2048xf32, #tpu.memory_space<any>>)
    return
  }
}

</mosaic_0001>

<bundles_post_ra>
// kernel: tpu_custom_call.1
= control target key start
LH: loop header
LB: loop body
LE: loop exit
PB: predicated region body
PF: predicated region fallthrough
CT: control target
= control target key end

     0   :  { %s34_s6 = smov [#allocation2]   ;;  %s35_s7 = smov [#allocation3]   ;;  %s53_s0 = inlined_call_operand.hbm [shape: f32[1,2048], index: 0, kind: input, shape index: {}]   ;;  %s54_s1 = inlined_call_operand.hbm [shape: f32[1,2048], index: 1, kind: output, shape index: {}]  }
   0x1   :  { %s36_s8 = smov 0  }
   0x2   :  { %18 = dma.general %s53_s0, 256, %s54_s1, %s34_s6, %s35_s7, [#allocation4], %s36_s8, 0  }
   0x3   :  { %32 = dma.done.wait [#allocation2], 256 }
   0x4   :  { %33 = vsyncadd [#allocation2], 4294967040 }
   0x5   :  { %22 = vsyncmov [#allocation2] }
   0x8   :  { %s23_s13 = vpop.sfrf %22 }
   0x9   :  { %p28_p0 = scmp.ne.s32.totalorder %s23_s13, 0 }
   0xb   :  { %27 = shalt.err (%p28_p0)  }

</bundles_post_ra>
